<compile_context>
chip_gen: v6e
topology: v6e:2x2x1
jax: 0.10.0
libtpu: 0.0.40
codegen_flags: <defaults>
</compile_context>

<pallas_src>
import jax
import jax.numpy as jnp
from jax.experimental import pallas as pl
from jax.experimental.pallas import tpu as pltpu


def _vit_output_kernel(x_ref, w_ref, b_ref, res_ref, out_ref):
    # x_ref:   (TM, K)  activation tile (cast to weight dtype in-kernel)
    # w_ref:   (K,  N)  dense weight, VMEM-resident across the whole grid
    # b_ref:   (1,  N)  dense bias, VMEM-resident
    # res_ref: (TM, N)  residual tile
    # out_ref: (TM, N)  output tile
    x = x_ref[...]
    if x.dtype != w_ref.dtype:
        # In-kernel cast (VPU) rides under the MXU-bound matmul; avoids a
        # separate full-HBM astype pass in the wrapper.
        x = x.astype(w_ref.dtype)
    acc = jnp.dot(x, w_ref[...], preferred_element_type=jnp.float32)
    acc = acc + b_ref[...].astype(jnp.float32)
    acc = acc + res_ref[...].astype(jnp.float32)
    out_ref[...] = acc.astype(out_ref.dtype)


def _forward(x2d, w, b2d, res2d, *, out_dtype, tm, grid_m, dims, vmem_limit,
             cost, single_buffer_weight, stream_buffers):
    M, K = x2d.shape
    N = w.shape[1]

    resident_kw = {}
    if single_buffer_weight:
        # Constant-index resident operands never need double buffering.
        resident_kw["pipeline_mode"] = pl.Buffered(1)
    stream_kw = {}
    if stream_buffers is not None and hasattr(pl, "Buffered"):
        stream_kw["pipeline_mode"] = pl.Buffered(stream_buffers)

    return pl.pallas_call(
        _vit_output_kernel,
        out_shape=jax.ShapeDtypeStruct((M, N), out_dtype),
        grid_spec=pltpu.PrefetchScalarGridSpec(
            num_scalar_prefetch=0,
            grid=(grid_m,),
            in_specs=[
                pl.BlockSpec((tm, K), lambda i: (i, 0), **stream_kw),   # x, streams
                pl.BlockSpec((K, N), lambda i: (0, 0), **resident_kw),  # weight
                pl.BlockSpec((1, N), lambda i: (0, 0), **resident_kw),  # bias
                pl.BlockSpec((tm, N), lambda i: (i, 0), **stream_kw),   # residual
            ],
            out_specs=pl.BlockSpec((tm, N), lambda i: (i, 0)),
        ),
        compiler_params=pltpu.CompilerParams(
            dimension_semantics=dims,
            vmem_limit_bytes=vmem_limit,
        ),
        cost_estimate=cost,
    )(x2d, w, b2d, res2d)


def vit_output(hidden_states, input_tensor, weight, bias, *,
               block_m=512, out_dtype=None, core_parallel=False,
               stream_buffers=None, extra_vmem_bytes=8 * 1024 * 1024):
    """Fused ViTOutput forward (inference only; dropout == identity).

    hidden_states: [B, S, K]   input_tensor (residual): [B, S, N]
    weight:        [K, N]      (transposed vs. torch nn.Linear's (N, K))
    bias:          [N]

    The MXU compute dtype is ``weight.dtype``: pre-convert the weight to
    bfloat16 *once* at parameter-load time for the production path.  The
    activation tile is cast to that dtype inside the kernel, so f32 or bf16
    activations both work with no extra HBM pass.  ``out_dtype`` defaults to
    ``hidden_states.dtype``.  ``core_parallel=True`` shards the row grid
    across v7x's two TensorCores; ``stream_buffers=3`` deepens the input
    pipeline (useful on MXU-bound v5e).
    """
    B, S, K = hidden_states.shape
    Kw, N = weight.shape
    assert Kw == K, (Kw, K)
    assert input_tensor.shape == (B, S, N), (input_tensor.shape, (B, S, N))
    M = B * S
    out_dtype = jnp.dtype(out_dtype) if out_dtype is not None else hidden_states.dtype

    # Reshapes / metadata only -- no per-call astype or pad passes over HBM.
    x2d = hidden_states.reshape(M, K)
    res2d = input_tensor.reshape(M, N)
    b2d = bias.reshape(1, N)

    # Row tile: multiple of 256 (full 256x256 MXU passes, >=512 rows reaches
    # the HBM-roofline plateau); smaller multiples only for tiny block_m.
    if M <= block_m:
        tm = M
    else:
        tm = block_m
        for mult in (256, 128, 16, 8):
            if block_m >= mult:
                tm = (block_m // mult) * mult
                break
    grid_m = pl.cdiv(M, tm)

    bpe = lambda dt: jnp.dtype(dt).itemsize

    def vmem_footprint(weight_buffers):
        xb = max(2, stream_buffers or 2)
        return int(weight_buffers * K * N * bpe(weight.dtype)   # resident weight
                   + N * bpe(bias.dtype)                        # resident bias
                   + xb * tm * K * bpe(x2d.dtype)               # x stream
                   + xb * tm * N * bpe(res2d.dtype)             # residual stream
                   + 2 * tm * N * bpe(out_dtype)                # output stream
                   + extra_vmem_bytes)                          # Mosaic scratch margin

    cost = pl.CostEstimate(
        flops=2 * M * K * N,
        transcendentals=0,
        bytes_accessed=(x2d.size * bpe(x2d.dtype)
                        + weight.size * bpe(weight.dtype)
                        + bias.size * bpe(bias.dtype)
                        + res2d.size * bpe(res2d.dtype)
                        + M * N * bpe(out_dtype)),
    )

    dims = (pltpu.CORE_PARALLEL,) if core_parallel else ("parallel",)

    common = dict(out_dtype=out_dtype, tm=tm, grid_m=grid_m, dims=dims,
                  cost=cost, stream_buffers=stream_buffers)

    if hasattr(pl, "Buffered"):
        try:
            out2d = _forward(x2d, weight, b2d, res2d,
                             vmem_limit=max(vmem_footprint(1), 32 * 1024 * 1024),
                             single_buffer_weight=True, **common)
            return out2d.reshape(B, S, N)
        except Exception:
            # pipeline_mode=pl.Buffered(1) not supported on this jax build;
            # fall back to default double-buffered resident weight.
            pass
    out2d = _forward(x2d, weight, b2d, res2d,
                     vmem_limit=max(vmem_footprint(2), 32 * 1024 * 1024),
                     single_buffer_weight=False, **common)
    return out2d.reshape(B, S, N)


if __name__ == "__main__":
    # Small ViT-ish shapes: batch=2, seq=8, intermediate(in)=64, hidden(out)=32
    B, S = 2, 8
    in_features, out_features = 64, 32
    dropout_prob = 0.1  # identity at inference

    key = jax.random.PRNGKey(0)
    k_x, k_res, k_w, k_b = jax.random.split(key, 4)

    hidden_states = jax.random.normal(k_x, (B, S, in_features), dtype=jnp.float32)
    input_tensor = jax.random.normal(k_res, (B, S, out_features), dtype=jnp.float32)

    # Deterministic parameter init (mimics nn.Linear uniform bound 1/sqrt(fan_in)).
    bound = 1.0 / (in_features ** 0.5)
    weight = jax.random.uniform(
        k_w, (in_features, out_features), minval=-bound, maxval=bound,
        dtype=jnp.float32)
    bias = jax.random.uniform(
        k_b, (out_features,), minval=-bound, maxval=bound, dtype=jnp.float32)

    # Pure-JAX reference.
    ref = jnp.einsum("bsk,kn->bsn", hidden_states, weight) + bias + input_tensor

    # 1) f32 weights -> pure f32 path, single tile, tight tolerance.
    out = vit_output(hidden_states, input_tensor, weight, bias)
    out = jax.block_until_ready(out)
    assert out.shape == (B, S, out_features)
    assert jnp.allclose(out, ref, atol=1e-5, rtol=1e-5)

    # 2) Production path: weight pre-converted to bf16 ONCE ("parameter-load
    #    time"); activations stay f32 in HBM and are cast in-kernel.
    weight_bf16 = weight.astype(jnp.bfloat16)
    out_bf16 = vit_output(hidden_states, input_tensor, weight_bf16, bias)
    out_bf16 = jax.block_until_ready(out_bf16)
    assert jnp.allclose(out_bf16, ref, atol=5e-2, rtol=5e-2)

    # 3) Multi-tile grid with M not divisible by block_m (exercises Pallas
    #    block padding + masked write-back of the last partial tile).
    B2, S2 = 2, 13   # M = 26, block_m = 16 -> grid of 2, last tile partial
    hs2 = jax.random.normal(k_x, (B2, S2, in_features), dtype=jnp.float32)
    res2 = jax.random.normal(k_res, (B2, S2, out_features), dtype=jnp.float32)
    out2 = vit_output(hs2, res2, weight, bias, block_m=16)
    out2 = jax.block_until_ready(out2)
    ref2 = jnp.einsum("bsk,kn->bsn", hs2, weight) + bias + res2
    assert jnp.allclose(out2, ref2, atol=1e-5, rtol=1e-5)

    print("KERNEL_OK")
</pallas_src>

<mosaic_0001>
module attributes {stable_mosaic.version = 11 : i64} {
  func.func @_vit_output_kernel(%arg0: i32, %arg1: memref<16x64xf32, #tpu.memory_space<vmem>>, %arg2: memref<64x32xf32, #tpu.memory_space<vmem>>, %arg3: memref<1x32xf32, #tpu.memory_space<vmem>>, %arg4: memref<16x32xf32, #tpu.memory_space<vmem>>, %arg5: memref<16x32xf32, #tpu.memory_space<vmem>>) attributes {dimension_semantics = [#tpu.dimension_semantics<parallel>], iteration_bounds = array<i64: 1>, scalar_prefetch = 0 : i64, scratch_operands = 0 : i64, tpu.core_type = #tpu.core_type<tc>, window_params = [{transform_indices = @transform_0, window_bounds = array<i64: 16, 64>}, {pipeline_mode = #tpu.pipeline_mode<synchronous>, transform_indices = @transform_1, window_bounds = array<i64: 64, 32>}, {pipeline_mode = #tpu.pipeline_mode<synchronous>, transform_indices = @transform_2, window_bounds = array<i64: 1, 32>}, {transform_indices = @transform_3, window_bounds = array<i64: 16, 32>}, {transform_indices = @transform_4, window_bounds = array<i64: 16, 32>}]} {
    %c0 = arith.constant 0 : index
    %c0_0 = arith.constant 0 : index
    %0 = vector.load %arg1[%c0, %c0_0] : memref<16x64xf32, #tpu.memory_space<vmem>>, vector<16x64xf32>
    %c0_1 = arith.constant 0 : index
    %c0_2 = arith.constant 0 : index
    %1 = vector.load %arg2[%c0_1, %c0_2] : memref<64x32xf32, #tpu.memory_space<vmem>>, vector<64x32xf32>
    %cst = arith.constant dense<0.000000e+00> : vector<16x32xf32>
    %2 = tpu.matmul %0, %1, %cst {dimension_numbers = #tpu.dot_dimension_numbers<[1], [0], [0], [1], [0, 0, 1, 1], [], []>} : vector<16x64xf32>, vector<64x32xf32>, vector<16x32xf32> -> vector<16x32xf32>
    %c0_3 = arith.constant 0 : index
    %c0_4 = arith.constant 0 : index
    %3 = vector.load %arg3[%c0_3, %c0_4] : memref<1x32xf32, #tpu.memory_space<vmem>>, vector<1x32xf32>
    %4 = vector.broadcast %3 : vector<1x32xf32> to vector<16x32xf32>
    %5 = arith.addf %2, %4 : vector<16x32xf32>
    %c0_5 = arith.constant 0 : index
    %c0_6 = arith.constant 0 : index
    %6 = vector.load %arg4[%c0_5, %c0_6] : memref<16x32xf32, #tpu.memory_space<vmem>>, vector<16x32xf32>
    %7 = arith.addf %5, %6 : vector<16x32xf32>
    %c0_7 = arith.constant 0 : index
    %c0_8 = arith.constant 0 : index
    %8 = vector.load %arg5[%c0_7, %c0_8] : memref<16x32xf32, #tpu.memory_space<vmem>>, vector<16x32xf32>
    tpu.vector_store %arg5[%c0_7, %c0_8], %7 {strides = array<i32>} : memref<16x32xf32, #tpu.memory_space<vmem>>, vector<16x32xf32>,
    return
  }
  func.func @transform_0(%arg0: i32) -> (i32, i32) {
    %c0_i32 = arith.constant 0 : i32
    %c0_i32_0 = arith.constant 0 : i32
    return %arg0, %c0_i32 : i32, i32
  }
  func.func @transform_1(%arg0: i32) -> (i32, i32) {
    %c0_i32 = arith.constant 0 : i32
    %c0_i32_0 = arith.constant 0 : i32
    %c0_i32_1 = arith.constant 0 : i32
    return %c0_i32, %c0_i32_0 : i32, i32
  }
  func.func @transform_2(%arg0: i32) -> (i32, i32) {
    %c0_i32 = arith.constant 0 : i32
    %c0_i32_0 = arith.constant 0 : i32
    %c0_i32_1 = arith.constant 0 : i32
    return %c0_i32, %c0_i32_0 : i32, i32
  }
  func.func @transform_3(%arg0: i32) -> (i32, i32) {
    %c0_i32 = arith.constant 0 : i32
    %c0_i32_0 = arith.constant 0 : i32
    return %arg0, %c0_i32 : i32, i32
  }
  func.func @transform_4(%arg0: i32) -> (i32, i32) {
    %c0_i32 = arith.constant 0 : i32
    %c0_i32_0 = arith.constant 0 : i32
    return %arg0, %c0_i32 : i32, i32
  }
}

module attributes {stable_mosaic.version = 11 : i64} {
  func.func @_vit_output_kernel(%arg0: i32, %arg1: memref<16x64xf32, #tpu.memory_space<vmem>>, %arg2: memref<64x32xf32, #tpu.memory_space<vmem>>, %arg3: memref<1x32xf32, #tpu.memory_space<vmem>>, %arg4: memref<16x32xf32, #tpu.memory_space<vmem>>, %arg5: memref<16x32xf32, #tpu.memory_space<vmem>>) attributes {dimension_semantics = [#tpu.dimension_semantics<parallel>], iteration_bounds = array<i64: 1>, scalar_prefetch = 0 : i64, scratch_operands = 0 : i64, tpu.core_type = #tpu.core_type<tc>, window_params = [{transform_indices = @transform_0, window_bounds = array<i64: 16, 64>}, {pipeline_mode = #tpu.pipeline_mode<synchronous>, transform_indices = @transform_1, window_bounds = array<i64: 64, 32>}, {pipeline_mode = #tpu.pipeline_mode<synchronous>, transform_indices = @transform_2, window_bounds = array<i64: 1, 32>}, {transform_indices = @transform_3, window_bounds = array<i64: 16, 32>}, {transform_indices = @transform_4, window_bounds = array<i64: 16, 32>}]} {
    %c0 = arith.constant 0 : index
    %c0_0 = arith.constant 0 : index
    %0 = vector.load %arg1[%c0, %c0_0] : memref<16x64xf32, #tpu.memory_space<vmem>>, vector<16x64xf32>
    %c0_1 = arith.constant 0 : index
    %c0_2 = arith.constant 0 : index
    %1 = vector.load %arg2[%c0_1, %c0_2] : memref<64x32xf32, #tpu.memory_space<vmem>>, vector<64x32xf32>
    %cst = arith.constant dense<0.000000e+00> : vector<16x32xf32>
    %2 = tpu.matmul %0, %1, %cst {dimension_numbers = #tpu.dot_dimension_numbers<[1], [0], [0], [1], [0, 0, 1, 1], [], []>} : vector<16x64xf32>, vector<64x32xf32>, vector<16x32xf32> -> vector<16x32xf32>
    %c0_3 = arith.constant 0 : index
    %c0_4 = arith.constant 0 : index
    %3 = vector.load %arg3[%c0_3, %c0_4] : memref<1x32xf32, #tpu.memory_space<vmem>>, vector<1x32xf32>
    %4 = vector.broadcast %3 : vector<1x32xf32> to vector<16x32xf32>
    %5 = arith.addf %2, %4 : vector<16x32xf32>
    %c0_5 = arith.constant 0 : index
    %c0_6 = arith.constant 0 : index
    %6 = vector.load %arg4[%c0_5, %c0_6] : memref<16x32xf32, #tpu.memory_space<vmem>>, vector<16x32xf32>
    %7 = arith.addf %5, %6 : vector<16x32xf32>
    %c0_7 = arith.constant 0 : index
    %c0_8 = arith.constant 0 : index
    %8 = vector.load %arg5[%c0_7, %c0_8] : memref<16x32xf32, #tpu.memory_space<vmem>>, vector<16x32xf32>
    tpu.vector_store %arg5[%c0_7, %c0_8], %7 {strides = array<i32>} : memref<16x32xf32, #tpu.memory_space<vmem>>, vector<16x32xf32>,
    return
  }
  func.func @transform_0(%arg0: i32) -> (i32, i32) {
    %c0_i32 = arith.constant 0 : i32
    %c0_i32_0 = arith.constant 0 : i32
    return %arg0, %c0_i32 : i32, i32
  }
  func.func @transform_1(%arg0: i32) -> (i32, i32) {
    %c0_i32 = arith.constant 0 : i32
    %c0_i32_0 = arith.constant 0 : i32
    %c0_i32_1 = arith.constant 0 : i32
    return %c0_i32, %c0_i32_0 : i32, i32
  }
  func.func @transform_2(%arg0: i32) -> (i32, i32) {
    %c0_i32 = arith.constant 0 : i32
    %c0_i32_0 = arith.constant 0 : i32
    %c0_i32_1 = arith.constant 0 : i32
    return %c0_i32, %c0_i32_0 : i32, i32
  }
  func.func @transform_3(%arg0: i32) -> (i32, i32) {
    %c0_i32 = arith.constant 0 : i32
    %c0_i32_0 = arith.constant 0 : i32
    return %arg0, %c0_i32 : i32, i32
  }
  func.func @transform_4(%arg0: i32) -> (i32, i32) {
    %c0_i32 = arith.constant 0 : i32
    %c0_i32_0 = arith.constant 0 : i32
    return %arg0, %c0_i32 : i32, i32
  }
}

</mosaic_0001>

<bundles_post_ra>
// kernel: tpu_custom_call.1
= control target key start
LH: loop header
LB: loop body
LE: loop exit
PB: predicated region body
PF: predicated region fallthrough
CT: control target
= control target key end

     0   :  { %vm35_vm0 = vcmask 523264   ;;  %s269_s0 = inlined_call_operand.vmem [shape: f32[16,64], index: 0, kind: input, shape index: {}]   ;;  %s270_s1 = inlined_call_operand.vmem [shape: f32[64,32], index: 1, kind: input, shape index: {}]   ;;  %s271_s2 = inlined_call_operand.vmem [shape: f32[1,32], index: 2, kind: input, shape index: {}]   ;;  %s272_s3 = inlined_call_operand.vmem [shape: f32[16,32], index: 3, kind: input, shape index: {}]   ;;  %s273_s4 = inlined_call_operand.hbm [shape: f32[16,32], index: 4, kind: output, shape index: {}]  }
   0x1   :  { %v27_v0 = vld [vmem:[%s270_s1 + $0x38] sm:$0xff]  ;;  %v26_v1 = vld [vmem:[%s270_s1 + $0x30] sm:$0xff]  ;;  %v25_v2 = vld [vmem:[%s270_s1 + $0x28] sm:$0xff] }
   0x2   :  { %153 = vmatprep.subr.mxu0 %v27_v0  ;;  %v18_v3 = vld [vmem:[%s269_s0] sm:$0xff] }
   0x3   :  { %154 = vmatpush3.msra.mxu0 %v27_v0  ;;  %169 = vmatprep.mubr.msk.f32.mxu0 %vm35_vm0, %v18_v3 }
   0x4   :  { %155 = vmatprep.subr.mxu0 %v26_v1 }
   0x5   :  { %9 = vsyncpa [#allocation3], 0  ;;  %156 = vmatpush3.msra.mxu0 %v26_v1  ;;  %v24_v4 = vld [vmem:[%s270_s1 + $0x20] sm:$0xff]  ;;  %v23_v5 = vld [vmem:[%s270_s1 + $0x18] sm:$0xff]  ;;  %vm121_vm1 = vcmask 261120  }
   0x6   :  { %157 = vmatprep.subr.mxu0 %v25_v2  ;;  %v22_v6 = vld [vmem:[%s270_s1 + $0x10] sm:$0xff]  ;;  %v21_v7 = vld [vmem:[%s270_s1 + $0x8] sm:$0xff]  ;;  %v20_v8 = vld [vmem:[%s270_s1] sm:$0xff]  ;;  %s197_s1 = smov [#allocation2]  }
   0x7   :  { %158 = vmatpush3.msra.mxu0 %v25_v2  ;;  %v19_v9 = vld [vmem:[%s269_s0 + $0x8] sm:$0xff]  ;;  %v140_v10 = vld [vmem:[%s271_s2] ss:$0 sm:$0xff]  ;;  %s129_s13 = sshll.u32 %s197_s1, 4  ;;  %s130_s13 = int_to_ptr.vmem [resolvable:$true] %s129_s13 }
   0x8   :  { %159 = vmatprep.subr.mxu0 %v24_v4  ;;  %v118_v12 = vld [vmem:[%s272_s3 + $0x8] sm:$0xff]  ;;  %v117_v15 = vld [vmem:[%s272_s3] sm:$0xff]  ;;  %s175_s2 = scalar_lea.vmem %s130_s13, 256  ;;  %p180_p1 = scmp.lt.s32.totalorder %s130_s13, %s130_s13 }
   0x9   :  { %160 = vmatpush3.msra.mxu0 %v24_v4  ;;  %p176_p0 = scmp.ne.s32.totalorder %s130_s13, %s175_s2  ;;  %p181_p2 = scmp.lt.s32.totalorder %s175_s2, %s175_s2 }
   0xa   :  { %161 = vmatprep.subr.mxu0 %v23_v5 }
   0xb   :  { %162 = vmatpush3.msra.mxu0 %v23_v5  ;;  %p182_p3 = por %p181_p2, %p180_p1 }
   0xc   :  { %163 = vmatprep.subr.mxu0 %v22_v6 }
   0xd   :  { %164 = vmatpush3.msra.mxu0 %v22_v6  ;;  %p183_p4 = pnand %p182_p3, %p176_p0 }
   0xe   :  { %165 = vmatprep.subr.mxu0 %v21_v7 }
   0xf   :  { %166 = vmatpush3.msra.mxu0 %v21_v7 }
  0x10   :  { %167 = vmatprep.subr.mxu0 %v20_v8 }
  0x11   :  { %168 = vmatpush3.msra.mxu0 %v20_v8 }
  0x12   :  { %170 = vmatmul.mubr.msk.f32.vlgmr.msra.gmra.mxu0 %vm35_vm0, %v19_v9 }
  0xd2   :  { %v171_v11 = vpop.f32.mrf.mxu0 }
  0xd3   :  { %v114_v13 = vadd.f32 %v171_v11, %v140_v10 }
  0xd4   :  { %v108_v14 = vpop.f32.mrf.mxu0 }
  0xd5   :  { %v120_v16 = vadd.f32 %v118_v12, %v114_v13  ;;  %v109_v17 = vadd.f32 %v140_v10, %v108_v14 }
  0xd7   :  { %123 = vst.msk [vmem:[#allocation2 + $0x8] sm:$0xff] %vm121_vm1, %v120_v16  ;;  %v119_v18 = vadd.f32 %v117_v15, %v109_v17 }
  0xd9   :  { %122 = vst.msk [vmem:[#allocation2] sm:$0xff] %vm121_vm1, %v119_v18 }
  0xda   :  { %186 = shalt.err (!%p183_p4)
}
  0xdb   :  { %s198_s15 = smov 128   ;;  %s199_s16 = smov 8  }
  0xdc   :  { %135 = dma.vmem_to_hbm [thread:$0]  %s130_s13, 256, %s273_s4, [#allocation3], %s198_s15, %s198_s15, %s199_s16  }
  0xdd   :  { %195 = dma.done.wait [#allocation3], 256  }
  0xde   :  { %196 = vsyncadd [#allocation3], 4294967040 }
  0xdf   :  { %139 = vsyncpa [#allocation3], 1 }

// kernel: tpu_custom_call.1
= control target key start
LH: loop header
LB: loop body
LE: loop exit
PB: predicated region body
PF: predicated region fallthrough
CT: control target
= control target key end

     0   :  { %vm35_vm0 = vcmask 523264   ;;  %s269_s0 = inlined_call_operand.vmem [shape: f32[16,64], index: 0, kind: input, shape index: {}]   ;;  %s270_s1 = inlined_call_operand.vmem [shape: f32[64,32], index: 1, kind: input, shape index: {}]   ;;  %s271_s2 = inlined_call_operand.vmem [shape: f32[1,32], index: 2, kind: input, shape index: {}]   ;;  %s272_s3 = inlined_call_operand.vmem [shape: f32[16,32], index: 3, kind: input, shape index: {}]   ;;  %s273_s4 = inlined_call_operand.hbm [shape: f32[16,32], index: 4, kind: output, shape index: {}]  }
   0x1   :  { %v27_v0 = vld [vmem:[%s270_s1 + $0x38] sm:$0xff]  ;;  %v26_v1 = vld [vmem:[%s270_s1 + $0x30] sm:$0xff]  ;;  %v25_v2 = vld [vmem:[%s270_s1 + $0x28] sm:$0xff] }
   0x2   :  { %153 = vmatprep.subr.mxu0 %v27_v0  ;;  %v18_v3 = vld [vmem:[%s269_s0] sm:$0xff] }
   0x3   :  { %154 = vmatpush3.msra.mxu0 %v27_v0  ;;  %169 = vmatprep.mubr.msk.f32.mxu0 %vm35_vm0, %v18_v3 }
   0x4   :  { %155 = vmatprep.subr.mxu0 %v26_v1 }
   0x5   :  { %9 = vsyncpa [#allocation3], 0  ;;  %156 = vmatpush3.msra.mxu0 %v26_v1  ;;  %v24_v4 = vld [vmem:[%s270_s1 + $0x20] sm:$0xff]  ;;  %v23_v5 = vld [vmem:[%s270_s1 + $0x18] sm:$0xff]  ;;  %vm121_vm1 = vcmask 261120  }
   0x6   :  { %157 = vmatprep.subr.mxu0 %v25_v2  ;;  %v22_v6 = vld [vmem:[%s270_s1 + $0x10] sm:$0xff]  ;;  %v21_v7 = vld [vmem:[%s270_s1 + $0x8] sm:$0xff]  ;;  %v20_v8 = vld [vmem:[%s270_s1] sm:$0xff]  ;;  %s197_s1 = smov [#allocation2]  }
   0x7   :  { %158 = vmatpush3.msra.mxu0 %v25_v2  ;;  %v19_v9 = vld [vmem:[%s269_s0 + $0x8] sm:$0xff]  ;;  %v140_v10 = vld [vmem:[%s271_s2] ss:$0 sm:$0xff]  ;;  %s129_s13 = sshll.u32 %s197_s1, 4  ;;  %s130_s13 = int_to_ptr.vmem [resolvable:$true] %s129_s13 }
   0x8   :  { %159 = vmatprep.subr.mxu0 %v24_v4  ;;  %v118_v12 = vld [vmem:[%s272_s3 + $0x8] sm:$0xff]  ;;  %v117_v15 = vld [vmem:[%s272_s3] sm:$0xff]  ;;  %s175_s2 = scalar_lea.vmem %s130_s13, 256  ;;  %p180_p1 = scmp.lt.s32.totalorder %s130_s13, %s130_s13 }
   0x9   :  { %160 = vmatpush3.msra.mxu0 %v24_v4  ;;  %p176_p0 = scmp.ne.s32.totalorder %s130_s13, %s175_s2  ;;  %p181_p2 = scmp.lt.s32.totalorder %s175_s2, %s175_s2 }
   0xa   :  { %161 = vmatprep.subr.mxu0 %v23_v5 }
   0xb   :  { %162 = vmatpush3.msra.mxu0 %v23_v5  ;;  %p182_p3 = por %p181_p2, %p180_p1 }
   0xc   :  { %163 = vmatprep.subr.mxu0 %v22_v6 }
   0xd   :  { %164 = vmatpush3.msra.mxu0 %v22_v6  ;;  %p183_p4 = pnand %p182_p3, %p176_p0 }
   0xe   :  { %165 = vmatprep.subr.mxu0 %v21_v7 }
   0xf   :  { %166 = vmatpush3.msra.mxu0 %v21_v7 }
  0x10   :  { %167 = vmatprep.subr.mxu0 %v20_v8 }
  0x11   :  { %168 = vmatpush3.msra.mxu0 %v20_v8 }
  0x12   :  { %170 = vmatmul.mubr.msk.f32.vlgmr.msra.gmra.mxu0 %vm35_vm0, %v19_v9 }
  0xd2   :  { %v171_v11 = vpop.f32.mrf.mxu0 }
  0xd3   :  { %v114_v13 = vadd.f32 %v171_v11, %v140_v10 }
  0xd4   :  { %v108_v14 = vpop.f32.mrf.mxu0 }
  0xd5   :  { %v120_v16 = vadd.f32 %v118_v12, %v114_v13  ;;  %v109_v17 = vadd.f32 %v140_v10, %v108_v14 }
  0xd7   :  { %123 = vst.msk [vmem:[#allocation2 + $0x8] sm:$0xff] %vm121_vm1, %v120_v16  ;;  %v119_v18 = vadd.f32 %v117_v15, %v109_v17 }
  0xd9   :  { %122 = vst.msk [vmem:[#allocation2] sm:$0xff] %vm121_vm1, %v119_v18 }
  0xda   :  { %186 = shalt.err (!%p183_p4)
}
  0xdb   :  { %s198_s15 = smov 128   ;;  %s199_s16 = smov 8  }
  0xdc   :  { %135 = dma.vmem_to_hbm [thread:$0]  %s130_s13, 256, %s273_s4, [#allocation3], %s198_s15, %s198_s15, %s199_s16  }
  0xdd   :  { %195 = dma.done.wait [#allocation3], 256  }
  0xde   :  { %196 = vsyncadd [#allocation3], 4294967040 }
  0xdf   :  { %139 = vsyncpa [#allocation3], 1 }

</bundles_post_ra>
